<compile_context>
chip_gen: v7x
topology: tpu7x:2x2x1
jax: 0.10.0
libtpu: 0.0.40
codegen_flags: <defaults>
</compile_context>

<pallas_src>
import functools
import math

import jax
import jax.numpy as jnp
from jax.experimental import pallas as pl
from jax.experimental.pallas import tpu as pltpu


# ----------------------------------------------------------------------------
# Fused Pallas kernel: input proj -> n residual blocks -> output head
# ----------------------------------------------------------------------------
def _fused_forward_kernel(x_ref, cond_ref,
                          w0_ref, c0_ref,
                          wmid_ref, bmid_ref,
                          wcnd_ref, bcnd_ref,
                          wout_ref, bout_ref,
                          w1_ref, b1_ref, w2_ref, b2_ref,
                          o_ref, *, n_layers, C):
    x_row = x_ref[0]                     # (1, N)
    cond = cond_ref[0]                   # (Cc, N) merged conditioning operand

    # Input projection: Conv1d(2 -> C, k=1) over [x, ones] + ReLU.
    # Contraction depth 2 -> VPU broadcast mul-add instead of an MXU pass.
    h = jnp.maximum(w0_ref[...] * x_row + c0_ref[...], 0.0)        # (C, N)

    # Conditioning projections for ALL layers in a single MXU pass: the cond
    # operand does not depend on layer activations, so the per-layer cond/tem/
    # spa weights are pre-stacked row-wise into (n_layers*2C, Cc) and applied
    # once, then sliced statically inside the layer loop.
    cond_all = (jnp.dot(wcnd_ref[...], cond, preferred_element_type=jnp.float32)
                + bcnd_ref[...])                                    # (n_layers*2C, N)

    inv_sqrt2 = 1.0 / math.sqrt(2.0)
    skip_acc = jnp.zeros_like(h)
    for l in range(n_layers):                                      # static unroll
        y = jnp.dot(wmid_ref[l], h, preferred_element_type=jnp.float32) + bmid_ref[l]
        v = y + cond_all[l * 2 * C:(l + 1) * 2 * C]                # (2C, N)
        # TODO(synk): TranResidualBlock source not provided; gated WaveNet-style
        # block (CSDI/PriSTI pattern). Gate/filter split order is an assumption.
        z = jax.nn.sigmoid(v[:C]) * jnp.tanh(v[C:])                # (C, N)
        out = jnp.dot(wout_ref[l], z, preferred_element_type=jnp.float32) + bout_ref[l]
        h = (h + out[:C]) * inv_sqrt2                              # residual
        skip_acc = skip_acc + out[C:]                              # skip accumulation

    # Output head fused as epilogue: sum/sqrt -> proj1 -> relu -> proj2.
    s = skip_acc * (1.0 / math.sqrt(n_layers))
    p = jnp.maximum(
        jnp.dot(w1_ref[...], s, preferred_element_type=jnp.float32) + b1_ref[...], 0.0)
    o_ref[0] = jnp.dot(w2_ref[...], p, preferred_element_type=jnp.float32) + b2_ref[...]


def _full_spec(shape):
    n = len(shape)
    return pl.BlockSpec(shape, lambda b, n=n: (0,) * n)


def fused_forward(x_kl, cond_in, pk, *, n_layers, C):
    B, _, N = x_kl.shape
    Cc = cond_in.shape[1]
    kernel = functools.partial(_fused_forward_kernel, n_layers=n_layers, C=C)
    weight_keys = ("w0", "c0", "wmid", "bmid", "wcnd", "bcnd",
                   "wout", "bout", "w1", "b1", "w2", "b2")
    return pl.pallas_call(
        kernel,
        out_shape=jax.ShapeDtypeStruct((B, 1, N), jnp.float32),
        grid=(B,),
        in_specs=[pl.BlockSpec((1, 1, N), lambda b: (b, 0, 0)),
                  pl.BlockSpec((1, Cc, N), lambda b: (b, 0, 0))]
                 + [_full_spec(pk[k].shape) for k in weight_keys],
        out_specs=pl.BlockSpec((1, 1, N), lambda b: (b, 0, 0)),
        compiler_params=pltpu.CompilerParams(dimension_semantics=("parallel",)),
    )(x_kl, cond_in, *[pk[k] for k in weight_keys])


# ----------------------------------------------------------------------------
# Parameter init (mirrors Conv1d_with_init = Conv1d(k=1) + kaiming_normal_)
# ----------------------------------------------------------------------------
def init_conv1x1_params(key, cin, cout, zero_weight=False):
    kw, kb = jax.random.split(key)
    std = math.sqrt(2.0 / cin)                 # kaiming_normal_, fan_in = cin * 1
    w = jnp.zeros((cout, cin), jnp.float32) if zero_weight else (
        std * jax.random.normal(kw, (cout, cin), jnp.float32))
    bound = 1.0 / math.sqrt(cin)
    b = jax.random.uniform(kb, (cout,), jnp.float32, -bound, bound)
    return {"w": w, "b": b}


def sinusoid_emb(pos, d):
    """Standard sinusoidal embedding. pos: (...,) -> (..., d)."""
    half = d // 2
    freqs = jnp.exp(-jnp.arange(half, dtype=jnp.float32)
                    * (math.log(10000.0) / max(half - 1, 1)))
    args = pos[..., None].astype(jnp.float32) * freqs
    return jnp.concatenate([jnp.sin(args), jnp.cos(args)], axis=-1)


class Config:
    trans_channels = 32
    d_model = 16
    spa_pos_emb_dim = 8
    nheads = 4
    c_out = 4
    trans_layers = 2


def init_model_params(key, configs, inputdim=2, num_nodes=16):
    C = configs.trans_channels
    side_dim = 1 + configs.spa_pos_emb_dim + configs.d_model
    keys = jax.random.split(key, 4 + 5 * configs.trans_layers)
    params = {
        "trans_inp_proj": init_conv1x1_params(keys[0], inputdim, C),
        "node_emb": 0.1 * jax.random.normal(
            keys[1], (configs.spa_pos_emb_dim, num_nodes), jnp.float32),
        "output_projection1": init_conv1x1_params(keys[2], C, C),
        "output_projection2": init_conv1x1_params(keys[3], C, 1, zero_weight=True),
        "layers": [],
    }
    for l in range(configs.trans_layers):
        k = keys[4 + 5 * l: 4 + 5 * (l + 1)]
        params["layers"].append({
            "mid": init_conv1x1_params(k[0], C, 2 * C),
            "cond": init_conv1x1_params(k[1], side_dim, 2 * C),
            "tem": init_conv1x1_params(k[2], configs.d_model, 2 * C),
            "spa": init_conv1x1_params(k[3], 1, 2 * C),
            "out": init_conv1x1_params(k[4], C, 2 * C),
        })
    return params


def pack_params(params, configs):
    """Pre-pack weights for the fused kernel: merged cond/tem/spa weight (padded
    to a multiple of 8 input channels) stacked row-wise across layers for one
    MXU pass, stacked per-layer mid/out weights, biases as (.., 1) columns,
    input-proj folded into a VPU mul-add form."""
    C = configs.trans_channels
    d = configs.d_model
    spa_dim = configs.spa_pos_emb_dim
    merged = (1 + spa_dim + d) + d + 1            # side_dim + tem + spa
    pad = (-merged) % 8

    w_inp = params["trans_inp_proj"]["w"]          # (C, 2)
    b_inp = params["trans_inp_proj"]["b"]          # (C,)
    w0 = w_inp[:, 0:1]                             # multiplies x
    c0 = (w_inp[:, 1] + b_inp)[:, None]            # ones-channel weight + bias

    wmid = jnp.stack([lp["mid"]["w"] for lp in params["layers"]])
    bmid = jnp.stack([lp["mid"]["b"][:, None] for lp in params["layers"]])
    # All layers' conditioning weights concatenated row-wise -> single matmul.
    wcnd = jnp.concatenate([
        jnp.concatenate([lp["cond"]["w"], lp["tem"]["w"], lp["spa"]["w"],
                         jnp.zeros((2 * C, pad), jnp.float32)], axis=1)
        for lp in params["layers"]], axis=0)                     # (n_layers*2C, Cc)
    bcnd = jnp.concatenate([(lp["cond"]["b"] + lp["tem"]["b"] + lp["spa"]["b"])[:, None]
                            for lp in params["layers"]], axis=0)  # (n_layers*2C, 1)
    wout = jnp.stack([lp["out"]["w"] for lp in params["layers"]])
    bout = jnp.stack([lp["out"]["b"][:, None] for lp in params["layers"]])

    return {
        "w0": w0, "c0": c0,
        "wmid": wmid, "bmid": bmid,
        "wcnd": wcnd, "bcnd": bcnd,
        "wout": wout, "bout": bout,
        "w1": params["output_projection1"]["w"],
        "b1": params["output_projection1"]["b"][:, None],
        "w2": params["output_projection2"]["w"],
        "b2": params["output_projection2"]["b"].reshape(1, 1),
        "node_emb": params["node_emb"],
    }


# ----------------------------------------------------------------------------
# Forward (thin XLA wrapper: embeddings + layout; all heavy math in the kernel)
# ----------------------------------------------------------------------------
def model_forward(pk, configs, inp, timestamps, mask, target_mask, weight_A):
    B, L, K = inp.shape
    C = configs.trans_channels
    d = configs.d_model
    spa_dim = configs.spa_pos_emb_dim
    N = K * L
    n_layers = configs.trans_layers

    x_kl = jnp.transpose(inp, (0, 2, 1)).reshape(B, 1, N).astype(jnp.float32)

    # TODO(synk): VariEmbedding source not provided; CSDI-style sinusoidal
    # temporal/positional embeddings + learned node embedding stand-in.
    tem_emb = jnp.transpose(sinusoid_emb(timestamps[:, :, 0], d), (0, 2, 1))   # (B,d,L)
    pos = sinusoid_emb(jnp.arange(L, dtype=jnp.float32), d)                    # (L,d)

    ext_mask = jnp.transpose(mask, (0, 2, 1)).reshape(B, 1, N)
    spa_pos = jnp.broadcast_to(pk["node_emb"][None, :, :, None],
                               (B, spa_dim, K, L)).reshape(B, spa_dim, N)
    tem_pos = jnp.broadcast_to(pos.T[None, :, None, :], (B, d, K, L)).reshape(B, d, N)
    tem_bcast = jnp.broadcast_to(tem_emb[:, :, None, :], (B, d, K, L)).reshape(B, d, N)
    # extra_spa_fea = weight_A[...,None].expand(B,K,K,L); only its mean over
    # axis=2 feeds conditioning, so compute the mean directly (no 4-D tensor).
    spa_mean = jnp.broadcast_to(weight_A.mean(axis=2)[:, :, None],
                                (B, K, L)).reshape(B, 1, N)

    Cc = pk["wcnd"].shape[-1]
    filled = 1 + spa_dim + d + d + 1
    cond_in = jnp.concatenate(
        [ext_mask, spa_pos, tem_pos, tem_bcast, spa_mean,
         jnp.zeros((B, Cc - filled, N), jnp.float32)], axis=1)       # (B, Cc, N)
    cond_in = cond_in.astype(jnp.float32)

    pred = fused_forward(x_kl, cond_in, pk, n_layers=n_layers, C=C)  # (B, 1, N)
    pred = jnp.transpose(pred.reshape(B, K, L), (0, 2, 1))           # (B, L, K)
    return pred, inp


# ----------------------------------------------------------------------------
# Pure-JAX (unfused) reference of the same math, for numerical validation
# ----------------------------------------------------------------------------
def _conv_ref(x, w, b):
    return jnp.einsum('oc,bcn->bon', w, x) + b[None, :, None]


def reference_forward(params, configs, inp, timestamps, mask, weight_A):
    B, L, K = inp.shape
    C = configs.trans_channels
    d = configs.d_model
    spa_dim = configs.spa_pos_emb_dim
    N = K * L

    x_kl = jnp.transpose(inp, (0, 2, 1)).reshape(B, 1, N)
    x2 = jnp.concatenate([x_kl, jnp.ones_like(x_kl)], axis=1)
    h = jax.nn.relu(_conv_ref(x2, params["trans_inp_proj"]["w"],
                              params["trans_inp_proj"]["b"]))

    tem_emb = jnp.transpose(sinusoid_emb(timestamps[:, :, 0], d), (0, 2, 1))
    pos = sinusoid_emb(jnp.arange(L, dtype=jnp.float32), d)
    tem_pos = jnp.broadcast_to(pos.T[None, :, None, :], (B, d, K, L)).reshape(B, d, N)
    spa_pos = jnp.broadcast_to(params["node_emb"][None, :, :, None],
                               (B, spa_dim, K, L)).reshape(B, spa_dim, N)
    ext_mask = jnp.transpose(mask, (0, 2, 1)).reshape(B, 1, N)
    side = jnp.concatenate([ext_mask, spa_pos, tem_pos], axis=1)
    spa_mean = jnp.broadcast_to(weight_A.mean(axis=2)[:, :, None],
                                (B, K, L)).reshape(B, 1, N)

    skip_sum = jnp.zeros((B, C, N), jnp.float32)
    for lp in params["layers"]:
        y = _conv_ref(h, lp["mid"]["w"], lp["mid"]["b"])
        cond = _conv_ref(side, lp["cond"]["w"], lp["cond"]["b"])
        tem = _conv_ref(tem_emb, lp["tem"]["w"], lp["tem"]["b"])            # (B,2C,L)
        tem = jnp.broadcast_to(tem[:, :, None, :], (B, 2 * C, K, L)).reshape(B, 2 * C, N)
        spa = _conv_ref(spa_mean, lp["spa"]["w"], lp["spa"]["b"])
        v = y + cond + tem + spa
        z = jax.nn.sigmoid(v[:, :C]) * jnp.tanh(v[:, C:])
        out = _conv_ref(z, lp["out"]["w"], lp["out"]["b"])
        h = (h + out[:, :C]) / math.sqrt(2.0)
        skip_sum = skip_sum + out[:, C:]

    s = skip_sum / math.sqrt(len(params["layers"]))
    p = jax.nn.relu(_conv_ref(s, params["output_projection1"]["w"],
                              params["output_projection1"]["b"]))
    pred = _conv_ref(p, params["output_projection2"]["w"],
                     params["output_projection2"]["b"])
    return jnp.transpose(pred.reshape(B, K, L), (0, 2, 1))


# ----------------------------------------------------------------------------
# Main
# ----------------------------------------------------------------------------
if __name__ == "__main__":
    configs = Config()
    B, L, K = 2, 8, 16   # K*L = 128 (one full lane tile)

    key = jax.random.PRNGKey(0)
    k_inp, k_ts, k_mask, k_tmask, k_A, k_param = jax.random.split(key, 6)

    inp = jax.random.normal(k_inp, (B, L, K), jnp.float32)
    timestamps = jnp.broadcast_to(
        jnp.arange(L, dtype=jnp.float32)[None, :, None], (B, L, 1))
    mask = jax.random.bernoulli(k_mask, 0.8, (B, L, K)).astype(jnp.float32)
    target_mask = jax.random.bernoulli(k_tmask, 0.9, (B, L, K)).astype(jnp.float32)
    weight_A = jax.random.uniform(k_A, (B, K, K), jnp.float32)

    params = init_model_params(k_param, configs, inputdim=2, num_nodes=K)
    pk = pack_params(params, configs)

    fwd = jax.jit(functools.partial(model_forward, pk, configs))
    pred, inp_out = fwd(inp, timestamps, mask, target_mask, weight_A)
    jax.block_until_ready((pred, inp_out))

    assert pred.shape == (B, L, K), pred.shape
    assert inp_out.shape == (B, L, K), inp_out.shape

    # Numerical check vs the unfused pure-JAX reference. Spec zero-inits
    # output_projection2 (pred is bias-only), so also check with a non-zero
    # head weight so upstream-layer math is actually exercised in the output.
    pred_ref = reference_forward(params, configs, inp, timestamps, mask, weight_A)
    err0 = float(jnp.max(jnp.abs(pred - pred_ref)))
    assert err0 < 1e-2, f"max abs err vs reference (zero head): {err0}"

    params_chk = dict(params)
    params_chk["output_projection2"] = init_conv1x1_params(
        jax.random.PRNGKey(123), configs.trans_channels, 1, zero_weight=False)
    pk_chk = pack_params(params_chk, configs)
    pred_chk, _ = jax.jit(functools.partial(model_forward, pk_chk, configs))(
        inp, timestamps, mask, target_mask, weight_A)
    pred_chk_ref = reference_forward(params_chk, configs, inp, timestamps, mask,
                                     weight_A)
    err1 = float(jnp.max(jnp.abs(pred_chk - pred_chk_ref)))
    assert err1 < 1e-2, f"max abs err vs reference (nonzero head): {err1}"

    print("KERNEL_OK")
</pallas_src>

<mosaic_0001>
module attributes {stable_mosaic.version = 11 : i64} {
  func.func @_fused_forward_kernel(%arg0: i32, %arg1: memref<1x1x128xf32, #tpu.memory_space<vmem>>, %arg2: memref<1x48x128xf32, #tpu.memory_space<vmem>>, %arg3: memref<32x1xf32, #tpu.memory_space<vmem>>, %arg4: memref<32x1xf32, #tpu.memory_space<vmem>>, %arg5: memref<2x64x32xf32, #tpu.memory_space<vmem>>, %arg6: memref<2x64x1xf32, #tpu.memory_space<vmem>>, %arg7: memref<128x48xf32, #tpu.memory_space<vmem>>, %arg8: memref<128x1xf32, #tpu.memory_space<vmem>>, %arg9: memref<2x64x32xf32, #tpu.memory_space<vmem>>, %arg10: memref<2x64x1xf32, #tpu.memory_space<vmem>>, %arg11: memref<32x32xf32, #tpu.memory_space<vmem>>, %arg12: memref<32x1xf32, #tpu.memory_space<vmem>>, %arg13: memref<1x32xf32, #tpu.memory_space<vmem>>, %arg14: memref<1x1xf32, #tpu.memory_space<vmem>>, %arg15: memref<1x1x128xf32, #tpu.memory_space<vmem>>) attributes {dimension_semantics = [#tpu.dimension_semantics<parallel>], iteration_bounds = array<i64: 2>, scalar_prefetch = 0 : i64, scratch_operands = 0 : i64, tpu.core_type = #tpu.core_type<tc>, window_params = [{transform_indices = @transform_0, window_bounds = array<i64: 1, 1, 128>}, {transform_indices = @transform_1, window_bounds = array<i64: 1, 48, 128>}, {pipeline_mode = #tpu.pipeline_mode<synchronous>, transform_indices = @transform_2, window_bounds = array<i64: 32, 1>}, {pipeline_mode = #tpu.pipeline_mode<synchronous>, transform_indices = @transform_3, window_bounds = array<i64: 32, 1>}, {pipeline_mode = #tpu.pipeline_mode<synchronous>, transform_indices = @transform_4, window_bounds = array<i64: 2, 64, 32>}, {pipeline_mode = #tpu.pipeline_mode<synchronous>, transform_indices = @transform_5, window_bounds = array<i64: 2, 64, 1>}, {pipeline_mode = #tpu.pipeline_mode<synchronous>, transform_indices = @transform_6, window_bounds = array<i64: 128, 48>}, {pipeline_mode = #tpu.pipeline_mode<synchronous>, transform_indices = @transform_7, window_bounds = array<i64: 128, 1>}, {pipeline_mode = #tpu.pipeline_mode<synchronous>, transform_indices = @transform_8, window_bounds = array<i64: 2, 64, 32>}, {pipeline_mode = #tpu.pipeline_mode<synchronous>, transform_indices = @transform_9, window_bounds = array<i64: 2, 64, 1>}, {pipeline_mode = #tpu.pipeline_mode<synchronous>, transform_indices = @transform_10, window_bounds = array<i64: 32, 32>}, {pipeline_mode = #tpu.pipeline_mode<synchronous>, transform_indices = @transform_11, window_bounds = array<i64: 32, 1>}, {pipeline_mode = #tpu.pipeline_mode<synchronous>, transform_indices = @transform_12, window_bounds = array<i64: 1, 32>}, {pipeline_mode = #tpu.pipeline_mode<synchronous>, transform_indices = @transform_13, window_bounds = array<i64: 1, 1>}, {transform_indices = @transform_14, window_bounds = array<i64: 1, 1, 128>}]} {
    %c0 = arith.constant 0 : index
    %c0_0 = arith.constant 0 : index
    %c0_1 = arith.constant 0 : index
    %0 = vector.load %arg1[%c0, %c0_0, %c0_1] : memref<1x1x128xf32, #tpu.memory_space<vmem>>, vector<1x1x128xf32>
    %1 = vector.shape_cast %0 : vector<1x1x128xf32> to vector<1x128xf32>
    %c0_2 = arith.constant 0 : index
    %c0_3 = arith.constant 0 : index
    %c0_4 = arith.constant 0 : index
    %2 = vector.load %arg2[%c0_2, %c0_3, %c0_4] : memref<1x48x128xf32, #tpu.memory_space<vmem>>, vector<1x48x128xf32>
    %3 = vector.shape_cast %2 : vector<1x48x128xf32> to vector<48x128xf32>
    %c0_5 = arith.constant 0 : index
    %c0_6 = arith.constant 0 : index
    %4 = vector.load %arg3[%c0_5, %c0_6] : memref<32x1xf32, #tpu.memory_space<vmem>>, vector<32x1xf32>
    %5 = vector.broadcast %4 : vector<32x1xf32> to vector<32x128xf32>
    %6 = vector.broadcast %1 : vector<1x128xf32> to vector<32x128xf32>
    %7 = arith.mulf %5, %6 : vector<32x128xf32>
    %c0_7 = arith.constant 0 : index
    %c0_8 = arith.constant 0 : index
    %8 = vector.load %arg4[%c0_7, %c0_8] : memref<32x1xf32, #tpu.memory_space<vmem>>, vector<32x1xf32>
    %9 = vector.broadcast %8 : vector<32x1xf32> to vector<32x128xf32>
    %10 = arith.addf %7, %9 : vector<32x128xf32>
    %cst = arith.constant 0.000000e+00 : f32
    %11 = vector.broadcast %cst : f32 to vector<32x128xf32>
    %12 = arith.maximumf %10, %11 : vector<32x128xf32>
    %c0_9 = arith.constant 0 : index
    %c0_10 = arith.constant 0 : index
    %13 = vector.load %arg7[%c0_9, %c0_10] : memref<128x48xf32, #tpu.memory_space<vmem>>, vector<128x48xf32>
    %cst_11 = arith.constant dense<0.000000e+00> : vector<128x128xf32>
    %14 = tpu.matmul %13, %3, %cst_11 {dimension_numbers = #tpu.dot_dimension_numbers<[1], [0], [0], [1], [0, 0, 1, 1], [], []>} : vector<128x48xf32>, vector<48x128xf32>, vector<128x128xf32> -> vector<128x128xf32>
    %c0_12 = arith.constant 0 : index
    %c0_13 = arith.constant 0 : index
    %15 = vector.load %arg8[%c0_12, %c0_13] : memref<128x1xf32, #tpu.memory_space<vmem>>, vector<128x1xf32>
    %16 = vector.broadcast %15 : vector<128x1xf32> to vector<128x128xf32>
    %17 = arith.addf %14, %16 : vector<128x128xf32>
    %cst_14 = arith.constant 0.000000e+00 : f32
    %18 = vector.broadcast %cst_14 : f32 to vector<32x128xf32>
    %c0_15 = arith.constant 0 : index
    %c0_16 = arith.constant 0 : index
    %c0_17 = arith.constant 0 : index
    %19 = vector.load %arg5[%c0_15, %c0_16, %c0_17] : memref<2x64x32xf32, #tpu.memory_space<vmem>>, vector<1x64x32xf32>
    %20 = vector.shape_cast %19 : vector<1x64x32xf32> to vector<64x32xf32>
    %cst_18 = arith.constant dense<0.000000e+00> : vector<64x128xf32>
    %21 = tpu.matmul %20, %12, %cst_18 {dimension_numbers = #tpu.dot_dimension_numbers<[1], [0], [0], [1], [0, 0, 1, 1], [], []>} : vector<64x32xf32>, vector<32x128xf32>, vector<64x128xf32> -> vector<64x128xf32>
    %c0_19 = arith.constant 0 : index
    %c0_20 = arith.constant 0 : index
    %c0_21 = arith.constant 0 : index
    %22 = vector.load %arg6[%c0_19, %c0_20, %c0_21] : memref<2x64x1xf32, #tpu.memory_space<vmem>>, vector<1x64x1xf32>
    %23 = vector.shape_cast %22 : vector<1x64x1xf32> to vector<64x1xf32>
    %24 = vector.broadcast %23 : vector<64x1xf32> to vector<64x128xf32>
    %25 = arith.addf %21, %24 : vector<64x128xf32>
    %26 = vector.extract_strided_slice %17 {offsets = [0, 0], sizes = [64, 128], strides = [1, 1]} : vector<128x128xf32> to vector<64x128xf32>
    %27 = arith.addf %25, %26 : vector<64x128xf32>
    %28 = vector.extract_strided_slice %27 {offsets = [0, 0], sizes = [32, 128], strides = [1, 1]} : vector<64x128xf32> to vector<32x128xf32>
    %29 = arith.negf %28 : vector<32x128xf32>
    %30 = math.exp %29 : vector<32x128xf32>
    %cst_22 = arith.constant 1.000000e+00 : f32
    %31 = vector.broadcast %cst_22 : f32 to vector<32x128xf32>
    %32 = arith.addf %31, %30 : vector<32x128xf32>
    %33 = arith.divf %31, %32 : vector<32x128xf32>
    %34 = vector.extract_strided_slice %27 {offsets = [32, 0], sizes = [32, 128], strides = [1, 1]} : vector<64x128xf32> to vector<32x128xf32>
    %35 = math.tanh %34 : vector<32x128xf32>
    %36 = arith.mulf %33, %35 : vector<32x128xf32>
    %c0_23 = arith.constant 0 : index
    %c0_24 = arith.constant 0 : index
    %c0_25 = arith.constant 0 : index
    %37 = vector.load %arg9[%c0_23, %c0_24, %c0_25] : memref<2x64x32xf32, #tpu.memory_space<vmem>>, vector<1x64x32xf32>
    %38 = vector.shape_cast %37 : vector<1x64x32xf32> to vector<64x32xf32>
    %cst_26 = arith.constant dense<0.000000e+00> : vector<64x128xf32>
    %39 = tpu.matmul %38, %36, %cst_26 {dimension_numbers = #tpu.dot_dimension_numbers<[1], [0], [0], [1], [0, 0, 1, 1], [], []>} : vector<64x32xf32>, vector<32x128xf32>, vector<64x128xf32> -> vector<64x128xf32>
    %c0_27 = arith.constant 0 : index
    %c0_28 = arith.constant 0 : index
    %c0_29 = arith.constant 0 : index
    %40 = vector.load %arg10[%c0_27, %c0_28, %c0_29] : memref<2x64x1xf32, #tpu.memory_space<vmem>>, vector<1x64x1xf32>
    %41 = vector.shape_cast %40 : vector<1x64x1xf32> to vector<64x1xf32>
    %42 = vector.broadcast %41 : vector<64x1xf32> to vector<64x128xf32>
    %43 = arith.addf %39, %42 : vector<64x128xf32>
    %44 = vector.extract_strided_slice %43 {offsets = [0, 0], sizes = [32, 128], strides = [1, 1]} : vector<64x128xf32> to vector<32x128xf32>
    %45 = arith.addf %12, %44 : vector<32x128xf32>
    %cst_30 = arith.constant 0.707106769 : f32
    %46 = vector.broadcast %cst_30 : f32 to vector<32x128xf32>
    %47 = arith.mulf %45, %46 : vector<32x128xf32>
    %48 = vector.extract_strided_slice %43 {offsets = [32, 0], sizes = [32, 128], strides = [1, 1]} : vector<64x128xf32> to vector<32x128xf32>
    %49 = arith.addf %18, %48 : vector<32x128xf32>
    %c1 = arith.constant 1 : index
    %c0_31 = arith.constant 0 : index
    %c0_32 = arith.constant 0 : index
    %50 = vector.load %arg5[%c1, %c0_31, %c0_32] : memref<2x64x32xf32, #tpu.memory_space<vmem>>, vector<1x64x32xf32>
    %51 = vector.shape_cast %50 : vector<1x64x32xf32> to vector<64x32xf32>
    %cst_33 = arith.constant dense<0.000000e+00> : vector<64x128xf32>
    %52 = tpu.matmul %51, %47, %cst_33 {dimension_numbers = #tpu.dot_dimension_numbers<[1], [0], [0], [1], [0, 0, 1, 1], [], []>} : vector<64x32xf32>, vector<32x128xf32>, vector<64x128xf32> -> vector<64x128xf32>
    %c1_34 = arith.constant 1 : index
    %c0_35 = arith.constant 0 : index
    %c0_36 = arith.constant 0 : index
    %53 = vector.load %arg6[%c1_34, %c0_35, %c0_36] : memref<2x64x1xf32, #tpu.memory_space<vmem>>, vector<1x64x1xf32>
    %54 = vector.shape_cast %53 : vector<1x64x1xf32> to vector<64x1xf32>
    %55 = vector.broadcast %54 : vector<64x1xf32> to vector<64x128xf32>
    %56 = arith.addf %52, %55 : vector<64x128xf32>
    %57 = vector.extract_strided_slice %17 {offsets = [64, 0], sizes = [64, 128], strides = [1, 1]} : vector<128x128xf32> to vector<64x128xf32>
    %58 = arith.addf %56, %57 : vector<64x128xf32>
    %59 = vector.extract_strided_slice %58 {offsets = [0, 0], sizes = [32, 128], strides = [1, 1]} : vector<64x128xf32> to vector<32x128xf32>
    %60 = arith.negf %59 : vector<32x128xf32>
    %61 = math.exp %60 : vector<32x128xf32>
    %cst_37 = arith.constant 1.000000e+00 : f32
    %62 = vector.broadcast %cst_37 : f32 to vector<32x128xf32>
    %63 = arith.addf %62, %61 : vector<32x128xf32>
    %64 = arith.divf %62, %63 : vector<32x128xf32>
    %65 = vector.extract_strided_slice %58 {offsets = [32, 0], sizes = [32, 128], strides = [1, 1]} : vector<64x128xf32> to vector<32x128xf32>
    %66 = math.tanh %65 : vector<32x128xf32>
    %67 = arith.mulf %64, %66 : vector<32x128xf32>
    %c1_38 = arith.constant 1 : index
    %c0_39 = arith.constant 0 : index
    %c0_40 = arith.constant 0 : index
    %68 = vector.load %arg9[%c1_38, %c0_39, %c0_40] : memref<2x64x32xf32, #tpu.memory_space<vmem>>, vector<1x64x32xf32>
    %69 = vector.shape_cast %68 : vector<1x64x32xf32> to vector<64x32xf32>
    %cst_41 = arith.constant dense<0.000000e+00> : vector<64x128xf32>
    %70 = tpu.matmul %69, %67, %cst_41 {dimension_numbers = #tpu.dot_dimension_numbers<[1], [0], [0], [1], [0, 0, 1, 1], [], []>} : vector<64x32xf32>, vector<32x128xf32>, vector<64x128xf32> -> vector<64x128xf32>
    %c1_42 = arith.constant 1 : index
    %c0_43 = arith.constant 0 : index
    %c0_44 = arith.constant 0 : index
    %71 = vector.load %arg10[%c1_42, %c0_43, %c0_44] : memref<2x64x1xf32, #tpu.memory_space<vmem>>, vector<1x64x1xf32>
    %72 = vector.shape_cast %71 : vector<1x64x1xf32> to vector<64x1xf32>
    %73 = vector.broadcast %72 : vector<64x1xf32> to vector<64x128xf32>
    %74 = arith.addf %70, %73 : vector<64x128xf32>
    %75 = vector.extract_strided_slice %74 {offsets = [32, 0], sizes = [32, 128], strides = [1, 1]} : vector<64x128xf32> to vector<32x128xf32>
    %76 = arith.addf %49, %75 : vector<32x128xf32>
    %cst_45 = arith.constant 0.707106769 : f32
    %77 = vector.broadcast %cst_45 : f32 to vector<32x128xf32>
    %78 = arith.mulf %76, %77 : vector<32x128xf32>
    %c0_46 = arith.constant 0 : index
    %c0_47 = arith.constant 0 : index
    %79 = vector.load %arg11[%c0_46, %c0_47] : memref<32x32xf32, #tpu.memory_space<vmem>>, vector<32x32xf32>
    %cst_48 = arith.constant dense<0.000000e+00> : vector<32x128xf32>
    %80 = tpu.matmul %79, %78, %cst_48 {dimension_numbers = #tpu.dot_dimension_numbers<[1], [0], [0], [1], [0, 0, 1, 1], [], []>} : vector<32x32xf32>, vector<32x128xf32>, vector<32x128xf32> -> vector<32x128xf32>
    %c0_49 = arith.constant 0 : index
    %c0_50 = arith.constant 0 : index
    %81 = vector.load %arg12[%c0_49, %c0_50] : memref<32x1xf32, #tpu.memory_space<vmem>>, vector<32x1xf32>
    %82 = vector.broadcast %81 : vector<32x1xf32> to vector<32x128xf32>
    %83 = arith.addf %80, %82 : vector<32x128xf32>
    %cst_51 = arith.constant 0.000000e+00 : f32
    %84 = vector.broadcast %cst_51 : f32 to vector<32x128xf32>
    %85 = arith.maximumf %83, %84 : vector<32x128xf32>
    %c0_52 = arith.constant 0 : index
    %c0_53 = arith.constant 0 : index
    %86 = vector.load %arg13[%c0_52, %c0_53] : memref<1x32xf32, #tpu.memory_space<vmem>>, vector<1x32xf32>
    %cst_54 = arith.constant dense<0.000000e+00> : vector<1x128xf32>
    %87 = tpu.matmul %86, %85, %cst_54 {dimension_numbers = #tpu.dot_dimension_numbers<[1], [0], [0], [1], [0, 0, 1, 1], [], []>} : vector<1x32xf32>, vector<32x128xf32>, vector<1x128xf32> -> vector<1x128xf32>
    %c0_55 = arith.constant 0 : index
    %c0_56 = arith.constant 0 : index
    %88 = vector.load %arg14[%c0_55, %c0_56] : memref<1x1xf32, #tpu.memory_space<vmem>>, vector<1x1xf32>
    %89 = vector.broadcast %88 : vector<1x1xf32> to vector<1x128xf32>
    %90 = arith.addf %87, %89 : vector<1x128xf32>
    %c0_57 = arith.constant 0 : index
    %c0_58 = arith.constant 0 : index
    %c0_59 = arith.constant 0 : index
    %91 = vector.load %arg15[%c0_57, %c0_58, %c0_59] : memref<1x1x128xf32, #tpu.memory_space<vmem>>, vector<1x1x128xf32>
    %92 = vector.shape_cast %91 : vector<1x1x128xf32> to vector<1x128xf32>
    %93 = vector.shape_cast %90 : vector<1x128xf32> to vector<1x1x128xf32>
    tpu.vector_store %arg15[%c0_57, %c0_58, %c0_59], %93 {strides = array<i32>} : memref<1x1x128xf32, #tpu.memory_space<vmem>>, vector<1x1x128xf32>,
    return
  }
  func.func @transform_0(%arg0: i32) -> (i32, i32, i32) {
    %c0_i32 = arith.constant 0 : i32
    %c0_i32_0 = arith.constant 0 : i32
    %c0_i32_1 = arith.constant 0 : i32
    return %arg0, %c0_i32, %c0_i32_0 : i32, i32, i32
  }
  func.func @transform_1(%arg0: i32) -> (i32, i32, i32) {
    %c0_i32 = arith.constant 0 : i32
    %c0_i32_0 = arith.constant 0 : i32
    %c0_i32_1 = arith.constant 0 : i32
    return %arg0, %c0_i32, %c0_i32_0 : i32, i32, i32
  }
  func.func @transform_2(%arg0: i32) -> (i32, i32) {
    %c0_i32 = arith.constant 0 : i32
    %c0_i32_0 = arith.constant 0 : i32
    %c0_i32_1 = arith.constant 0 : i32
    return %c0_i32, %c0_i32_0 : i32, i32
  }
  func.func @transform_3(%arg0: i32) -> (i32, i32) {
    %c0_i32 = arith.constant 0 : i32
    %c0_i32_0 = arith.constant 0 : i32
    %c0_i32_1 = arith.constant 0 : i32
    return %c0_i32, %c0_i32_0 : i32, i32
  }
  func.func @transform_4(%arg0: i32) -> (i32, i32, i32) {
    %c0_i32 = arith.constant 0 : i32
    %c0_i32_0 = arith.constant 0 : i32
    %c0_i32_1 = arith.constant 0 : i32
    %c0_i32_2 = arith.constant 0 : i32
    return %c0_i32, %c0_i32_0, %c0_i32_1 : i32, i32, i32
  }
  func.func @transform_5(%arg0: i32) -> (i32, i32, i32) {
    %c0_i32 = arith.constant 0 : i32
    %c0_i32_0 = arith.constant 0 : i32
    %c0_i32_1 = arith.constant 0 : i32
    %c0_i32_2 = arith.constant 0 : i32
    return %c0_i32, %c0_i32_0, %c0_i32_1 : i32, i32, i32
  }
  func.func @transform_6(%arg0: i32) -> (i32, i32) {
    %c0_i32 = arith.constant 0 : i32
    %c0_i32_0 = arith.constant 0 : i32
    %c0_i32_1 = arith.constant 0 : i32
    return %c0_i32, %c0_i32_0 : i32, i32
  }
  func.func @transform_7(%arg0: i32) -> (i32, i32) {
    %c0_i32 = arith.constant 0 : i32
    %c0_i32_0 = arith.constant 0 : i32
    %c0_i32_1 = arith.constant 0 : i32
    return %c0_i32, %c0_i32_0 : i32, i32
  }
  func.func @transform_8(%arg0: i32) -> (i32, i32, i32) {
    %c0_i32 = arith.constant 0 : i32
    %c0_i32_0 = arith.constant 0 : i32
    %c0_i32_1 = arith.constant 0 : i32
    %c0_i32_2 = arith.constant 0 : i32
    return %c0_i32, %c0_i32_0, %c0_i32_1 : i32, i32, i32
  }
  func.func @transform_9(%arg0: i32) -> (i32, i32, i32) {
    %c0_i32 = arith.constant 0 : i32
    %c0_i32_0 = arith.constant 0 : i32
    %c0_i32_1 = arith.constant 0 : i32
    %c0_i32_2 = arith.constant 0 : i32
    return %c0_i32, %c0_i32_0, %c0_i32_1 : i32, i32, i32
  }
  func.func @transform_10(%arg0: i32) -> (i32, i32) {
    %c0_i32 = arith.constant 0 : i32
    %c0_i32_0 = arith.constant 0 : i32
    %c0_i32_1 = arith.constant 0 : i32
    return %c0_i32, %c0_i32_0 : i32, i32
  }
  func.func @transform_11(%arg0: i32) -> (i32, i32) {
    %c0_i32 = arith.constant 0 : i32
    %c0_i32_0 = arith.constant 0 : i32
    %c0_i32_1 = arith.constant 0 : i32
    return %c0_i32, %c0_i32_0 : i32, i32
  }
  func.func @transform_12(%arg0: i32) -> (i32, i32) {
    %c0_i32 = arith.constant 0 : i32
    %c0_i32_0 = arith.constant 0 : i32
    %c0_i32_1 = arith.constant 0 : i32
    return %c0_i32, %c0_i32_0 : i32, i32
  }
  func.func @transform_13(%arg0: i32) -> (i32, i32) {
    %c0_i32 = arith.constant 0 : i32
    %c0_i32_0 = arith.constant 0 : i32
    %c0_i32_1 = arith.constant 0 : i32
    return %c0_i32, %c0_i32_0 : i32, i32
  }
  func.func @transform_14(%arg0: i32) -> (i32, i32, i32) {
    %c0_i32 = arith.constant 0 : i32
    %c0_i32_0 = arith.constant 0 : i32
    %c0_i32_1 = arith.constant 0 : i32
    return %arg0, %c0_i32, %c0_i32_0 : i32, i32, i32
  }
}

</mosaic_0001>

<bundles_post_ra>
// kernel: model_forward.1
= control target key start
LH: loop header
LB: loop body
LE: loop exit
PB: predicated region body
PF: predicated region fallthrough
CT: control target
= control target key end

     0   :  { %s2567_s15 = smov 0   ;;  %s3018_s0 = inlined_call_operand.vmem [shape: f32[2,1,128], index: 0, kind: input, shape index: {}]   ;;  %s3019_s1 = inlined_call_operand.vmem [shape: f32[2,48,128], index: 1, kind: input, shape index: {}]   ;;  %s3020_s2 = inlined_call_operand.vmem [shape: f32[32,1], index: 2, kind: input, shape index: {}]   ;;  %s3021_s3 = inlined_call_operand.vmem [shape: f32[32,1], index: 3, kind: input, shape index: {}]   ;;  %s3022_s4 = inlined_call_operand.vmem [shape: f32[2,64,32], index: 4, kind: input, shape index: {}]   ;;  %s3023_s5 = inlined_call_operand.vmem [shape: f32[2,64,1], index: 5, kind: input, shape index: {}]   ;;  %s3024_s6 = inlined_call_operand.vmem [shape: f32[128,48], index: 6, kind: input, shape index: {}]   ;;  %s3025_s7 = inlined_call_operand.vmem [shape: f32[128,1], index: 7, kind: input, shape index: {}]   ;;  %s3026_s8 = inlined_call_operand.vmem [shape: f32[2,64,32], index: 8, kind: input, shape index: {}]   ;;  %s3027_s9 = inlined_call_operand.vmem [shape: f32[2,64,1], index: 9, kind: input, shape index: {}]   ;;  %s3028_s10 = inlined_call_operand.vmem [shape: f32[32,32], index: 10, kind: input, shape index: {}]   ;;  %s3029_s11 = inlined_call_operand.vmem [shape: f32[32,1], index: 11, kind: input, shape index: {}]   ;;  %s3030_s12 = inlined_call_operand.vmem [shape: f32[1,32], index: 12, kind: input, shape index: {}]   ;;  %s3031_s13 = inlined_call_operand.<no memory space> [shape: f32[1,1], index: 13, kind: input, shape index: {}]   ;;  %s3032_s14 = inlined_call_operand.vmem [shape: f32[2,1,128], index: 14, kind: output, shape index: {}]  }
   0x1   :  { %v19_v0 = vstv %s3031_s13 }
   0x2   :  { %20 = vst [vmem:[#allocation2] sm:$0x1] %v19_v0 }
   0x3 LB: > { %s1966_s16 = sadd.s32 4294967295, %s2483_s15   ;;  %p1970_p0 = scmp.ge.s32.totalorder %s2483_s15, 1  ;;  %s2483_s15 = sphi %s2567_s15, %s26_s15  }
   0x4   : > { %p422_p1 = scmp.lt.s32.totalorder %s2483_s15, 3 }
   0x6   : > { %p423_p2 = pnand %p1970_p0, %p422_p1 }
   0x7   : > { %v521_v1 = vld [vmem:[%s3021_s3] sm:$0xff] (!%p423_p2)  ;;  %p469_p3 = scmp.lt.s32.totalorder (!%p423_p2), %s1966_s16, 1  ;;  %v2485_v3 = vmov (!%p423_p2), 0   ;;  %vm665_vm0 = vcmask (!%p423_p2), 392192   ;;  %v522_v4 = vld [vmem:[%s3021_s3 + $0x8] sm:$0xff] (!%p423_p2)  ;;  %v490_v7 = vld [vmem:[%s3020_s2 + $0x18] sm:$0xff] (!%p423_p2) }
   0x8   : > { %426 = sbr.rel (%p423_p2) target bundleno = 1571 (0x623), region = 76  ;;  %v487_v2 = vld [vmem:[%s3020_s2] sm:$0xff] (!%p423_p2)  ;;  %2428 = vset.pattern.permute.xlu1 (!%p423_p2), %v2485_v3  ;;  %2427 = vset.pattern.permute.xlu0 (!%p423_p2), %v2485_v3  ;;  %v488_v5 = vld [vmem:[%s3020_s2 + $0x8] sm:$0xff] (!%p423_p2)  ;;  %v489_v8 = vld [vmem:[%s3020_s2 + $0x10] sm:$0xff] (!%p423_p2)  ;;  %vm915_vm1 = vcmask (!%p423_p2), 261120   ;;  %vm2487_vm2 = vmmov (!%p423_p2), 0  }
   0x9   : > { %527 = vperm.xlu1 (!%p423_p2), %2428, %v521_v1   ;;  %493 = vperm.xlu0 (!%p423_p2), %2427, %v487_v2   ;;  %v553_v6 = vld [vmem:[%s3024_s6] sm:$0xff] (!%p423_p2)  ;;  %v524_v17 = vld [vmem:[%s3021_s3 + $0x18] sm:$0xff] (!%p423_p2)  ;;  %v523_v18 = vld [vmem:[%s3021_s3 + $0x10] sm:$0xff] (!%p423_p2) }
   0xa   : > { %2163 = vmatprep.mubr.msk.f32.mxu0 (!%p423_p2), %vm665_vm0, %v553_v6  ;;  %v570_v20 = vld [vmem:[%s3025_s7 + $0x8] sm:$0xff] (!%p423_p2)  ;;  %v569_v21 = vld [vmem:[%s3025_s7] sm:$0xff] (!%p423_p2)  ;;  %v555_v25 = vld [vmem:[%s3024_s6 + $0x10] sm:$0xff] (!%p423_p2) }
   0xb   : > { %v868_v22 = vld [vmem:[%s3023_s5 + $0x8] sm:$0xff] (!%p423_p2)  ;;  %v867_v23 = vld [vmem:[%s3023_s5] sm:$0xff] (!%p423_p2)  ;;  %v572_v26 = vld [vmem:[%s3025_s7 + $0x18] sm:$0xff] (!%p423_p2) }
   0xc   : > { %v554_v24 = vld [vmem:[%s3024_s6 + $0x8] sm:$0xff] (!%p423_p2)  ;;  %v571_v27 = vld [vmem:[%s3025_s7 + $0x10] sm:$0xff] (!%p423_p2)  ;;  %v556_v28 = vld [vmem:[%s3024_s6 + $0x18] sm:$0xff] (!%p423_p2) }
   0xd   : > { %532 = vperm.xlu1 (!%p423_p2), %2428, %v522_v4   ;;  %498 = vperm.xlu0 (!%p423_p2), %2427, %v488_v5   ;;  %v557_v29 = vld [vmem:[%s3024_s6 + $0x20] sm:$0xff] (!%p423_p2)  ;;  %v870_v30 = vld [vmem:[%s3023_s5 + $0x18] sm:$0xff] (!%p423_p2)  ;;  %v869_v31 = vld [vmem:[%s3023_s5 + $0x10] sm:$0xff] (!%p423_p2) }
   0xe   : > { %v558_v32 = vld [vmem:[%s3024_s6 + $0x28] sm:$0xff] (!%p423_p2)  ;;  %v559_v33 = vld [vmem:[%s3024_s6 + $0x30] sm:$0xff] (!%p423_p2)  ;;  %v573_v35 = vld [vmem:[%s3025_s7 + $0x20] sm:$0xff] (!%p423_p2) }
   0xf   : > { %s3034_s16 = smov (!%p469_p3, %s1966_s16), 1  ;;  %v574_v34 = vld [vmem:[%s3025_s7 + $0x28] sm:$0xff]  ;;  %v560_v36 = vld [vmem:[%s3024_s6 + $0x38] sm:$0xff]  ;;  %v561_v37 = vld [vmem:[%s3024_s6 + $0x40] sm:$0xff] }
  0x10   : > { %s2414_s26 = smul.u32 48, %s3034_s16  ;;  %v872_v38 = vld [vmem:[%s3023_s5 + $0x28] sm:$0xff]  ;;  %v871_v39 = vld [vmem:[%s3023_s5 + $0x20] sm:$0xff]  ;;  %v563_v41 = vld [vmem:[%s3024_s6 + $0x50] sm:$0xff] }
  0x11   : > { %508 = vperm.xlu1 %2428, %v490_v7   ;;  %503 = vperm.xlu0 %2427, %v489_v8   ;;  %v562_v40 = vld [vmem:[%s3024_s6 + $0x48] sm:$0xff]  ;;  %v576_v42 = vld [vmem:[%s3025_s7 + $0x38] sm:$0xff]  ;;  %v575_v43 = vld [vmem:[%s3025_s7 + $0x30] sm:$0xff] }
  0x12   : > { %s476_s13 = scalar_lea.vmem %s3019_s1, %s2414_s26  ;;  %v564_v44 = vld [vmem:[%s3024_s6 + $0x58] sm:$0xff]  ;;  %v565_v45 = vld [vmem:[%s3024_s6 + $0x60] sm:$0xff]  ;;  %v873_v47 = vld [vmem:[%s3023_s5 + $0x30] sm:$0xff] }
  0x13   : > { %v481_v9 = vld [vmem:[%s476_s13] sm:$0xff]  ;;  %v482_v10 = vld [vmem:[%s476_s13 + $0x8] sm:$0xff]  ;;  %v483_v11 = vld [vmem:[%s476_s13 + $0x10] sm:$0xff] }
  0x14   : > { %v2292_v12 = vpack.c.bf16 %v482_v10, %v481_v9  ;;  %v484_v13 = vld [vmem:[%s476_s13 + $0x18] sm:$0xff]  ;;  %v485_v15 = vld [vmem:[%s476_s13 + $0x20] sm:$0xff]  ;;  %v486_v16 = vld [vmem:[%s476_s13 + $0x28] sm:$0xff]  ;;  %s471_s13 = scalar_lea.vmem %s3018_s0, %s3034_s16 }
  0x15   : > { %v2296_v14 = vpack.c.bf16 %v484_v13, %v483_v11  ;;  %v2300_v19 = vpack.c.bf16 %v486_v16, %v485_v15  ;;  %542 = vperm.xlu1 %2428, %v524_v17   ;;  %537 = vperm.xlu0 %2427, %v523_v18   ;;  %v874_v46 = vld [vmem:[%s3023_s5 + $0x38] sm:$0xff]  ;;  %v566_v48 = vld [vmem:[%s3024_s6 + $0x68] sm:$0xff]  ;;  %v567_v49 = vld [vmem:[%s3024_s6 + $0x70] sm:$0xff] }
  0x16   : > { %2293 = vmatprep.subr.bf16.mxu0 %v2292_v12  ;;  %v1094_v50 = vld [vmem:[%s3027_s9 + $0x8] sm:$0xff]  ;;  %v1093_v51 = vld [vmem:[%s3027_s9] sm:$0xff]  ;;  %v568_v52 = vld [vmem:[%s3024_s6 + $0x78] sm:$0xff] }
  0x17   : > { %2295 = vmatpush3.bf16.msra.mxu0 %v2292_v12  ;;  %v859_v53 = vld [vmem:[%s3022_s4] sm:$0xff]  ;;  %v1096_v54 = vld [vmem:[%s3027_s9 + $0x18] sm:$0xff]  ;;  %v1095_v55 = vld [vmem:[%s3027_s9 + $0x10] sm:$0xff] }
  0x18   : > { %2297 = vmatprep.subr.bf16.mxu0 %v2296_v14  ;;  %v578_v56 = vld [vmem:[%s3025_s7 + $0x48] sm:$0xff]  ;;  %v577_v57 = vld [vmem:[%s3025_s7 + $0x40] sm:$0xff]  ;;  %v580_v60 = vld [vmem:[%s3025_s7 + $0x58] sm:$0xff] }
  0x19   : > { %592 = vperm.xlu1 %2428, %v570_v20   ;;  %587 = vperm.xlu0 %2427, %v569_v21   ;;  %v2018_v58 = vld [vmem:[%s3023_s5 + $0x48] sm:$0xff]  ;;  %v2017_v59 = vld [vmem:[%s3023_s5 + $0x40] sm:$0xff]  ;;  %v579_v61 = vld [vmem:[%s3025_s7 + $0x50] sm:$0xff] }
  0x1a   : > { %v2020_v62 = vld [vmem:[%s3023_s5 + $0x58] sm:$0xff]  ;;  %v2019_v63 = vld [vmem:[%s3023_s5 + $0x50] sm:$0xff]  ;;  %v582_v0 = vld [vmem:[%s3025_s7 + $0x68] sm:$0xff] }
  0x1b   : > { %2299 = vmatpush3.bf16.msra.mxu0 %v2296_v14  ;;  %v581_v1 = vld [vmem:[%s3025_s7 + $0x60] sm:$0xff]  ;;  %v2022_v2 = vld [vmem:[%s3023_s5 + $0x68] sm:$0xff]  ;;  %v584_v4 = vld [vmem:[%s3025_s7 + $0x78] sm:$0xff] }
  0x1c   : > { %2301 = vmatprep.subr.bf16.mxu0 %v2300_v19  ;;  %v2021_v3 = vld [vmem:[%s3023_s5 + $0x60] sm:$0xff]  ;;  %v583_v5 = vld [vmem:[%s3025_s7 + $0x70] sm:$0xff]  ;;  %v2024_v6 = vld [vmem:[%s3023_s5 + $0x78] sm:$0xff] }
  0x1d   : > { %882 = vperm.xlu1 %2428, %v868_v22   ;;  %877 = vperm.xlu0 %2427, %v867_v23   ;;  %v2023_v7 = vld [vmem:[%s3023_s5 + $0x70] sm:$0xff]  ;;  %v1098_v8 = vld [vmem:[%s3027_s9 + $0x28] sm:$0xff]  ;;  %v1097_v9 = vld [vmem:[%s3027_s9 + $0x20] sm:$0xff] }
  0x1e   : > { %v2050_v10 = vld [vmem:[%s3027_s9 + $0x68] sm:$0xff]  ;;  %v2049_v11 = vld [vmem:[%s3027_s9 + $0x60] sm:$0xff]  ;;  %v1100_v12 = vld [vmem:[%s3027_s9 + $0x38] sm:$0xff] }
  0x1f   : > { %2303 = vmatpush3.bf16.msra.mxu0 %v2300_v19  ;;  %v1099_v13 = vld [vmem:[%s3027_s9 + $0x30] sm:$0xff]  ;;  %v2052_v14 = vld [vmem:[%s3027_s9 + $0x78] sm:$0xff]  ;;  %v1701_v16 = vld [vmem:[%s3029_s11 + $0x8] sm:$0xff] }
  0x20   : > { %v2051_v15 = vld [vmem:[%s3027_s9 + $0x70] sm:$0xff]  ;;  %v1700_v17 = vld [vmem:[%s3029_s11] sm:$0xff]  ;;  %v1703_v18 = vld [vmem:[%s3029_s11 + $0x18] sm:$0xff] }
  0x21   : > { %602 = vperm.xlu1 %2428, %v572_v26   ;;  %597 = vperm.xlu0 %2427, %v571_v27   ;;  %v1702_v19 = vld [vmem:[%s3029_s11 + $0x10] sm:$0xff]  ;;  %v1826_v20 = vld [vmem:[#allocation2] sm:$0x1] }
  0x22   : > { %2164 = vmatmul.mubr.msk.f32.vlgmr.msra.gmra.mrb[0].mxu0 %vm665_vm0, %v554_v24  ;;  %v1972_v21 = vld [vmem:[%s471_s13] ss:$0 sm:$0xff]  ;;  %s479_s13 = scalar_lea.vmem %s3032_s14, %s3034_s16 }
  0x23   : > { %2166 = vmatprep.mubr.msk.f32.mxu0 %vm665_vm0, %v555_v25 }
  0x25   : > { %892 = vperm.xlu1 %2428, %v870_v30   ;;  %887 = vperm.xlu0 %2427, %v869_v31  }
  0x26   : > { %2167 = vmatmul.mubr.msk.f32.gmra.mrb[2].mxu0 %vm665_vm0, %v556_v28 }
  0x27   : > { %2169 = vmatprep.mubr.msk.f32.mxu0 %vm665_vm0, %v557_v29 }
  0x29   : > { %612 = vperm.xlu1 %2428, %v574_v34   ;;  %607 = vperm.xlu0 %2427, %v573_v35  }
  0x2a   : > { %2170 = vmatmul.mubr.msk.f32.gmra.mrb[4].mxu0 %vm665_vm0, %v558_v32 }
  0x2b   : > { %2172 = vmatprep.mubr.msk.f32.mxu0 %vm665_vm0, %v559_v33 }
  0x2d   : > { %902 = vperm.xlu1 %2428, %v872_v38   ;;  %897 = vperm.xlu0 %2427, %v871_v39  }
  0x2e   : > { %2173 = vmatmul.mubr.msk.f32.gmra.mrb[6].mxu0 %vm665_vm0, %v560_v36 }
  0x2f   : > { %2175 = vmatprep.mubr.msk.f32.mxu0 %vm665_vm0, %v561_v37 }
  0x31   : > { %622 = vperm.xlu1 %2428, %v576_v42   ;;  %617 = vperm.xlu0 %2427, %v575_v43  }
  0x32   : > { %2176 = vmatmul.mubr.msk.f32.gmra.mrb[8].mxu0 %vm665_vm0, %v562_v40 }
  0x33   : > { %2178 = vmatprep.mubr.msk.f32.mxu0 %vm665_vm0, %v563_v41 }
  0x35   : > { %912 = vperm.xlu1 %2428, %v874_v46   ;;  %907 = vperm.xlu0 %2427, %v873_v47   ;;  %v862_v46 = vld [vmem:[%s3022_s4 + $0x18] sm:$0xff]  ;;  %v863_v47 = vld [vmem:[%s3022_s4 + $0x20] sm:$0xff] }
  0x36   : > { %2179 = vmatmul.mubr.msk.f32.gmra.mrb[10].mxu0 %vm665_vm0, %v564_v44  ;;  %v860_v44 = vld [vmem:[%s3022_s4 + $0x8] sm:$0xff] }
  0x37   : > { %2181 = vmatprep.mubr.msk.f32.mxu0 %vm665_vm0, %v565_v45  ;;  %v861_v45 = vld [vmem:[%s3022_s4 + $0x10] sm:$0xff] }
  0x39   : > { %1108 = vperm.xlu1 %2428, %v1094_v50   ;;  %1103 = vperm.xlu0 %2427, %v1093_v51   ;;  %v866_v50 = vld [vmem:[%s3022_s4 + $0x38] sm:$0xff] }
  0x3a   : > { %2182 = vmatmul.mubr.msk.f32.gmra.mrb[12].mxu0 %vm665_vm0, %v566_v48  ;;  %v864_v48 = vld [vmem:[%s3022_s4 + $0x28] sm:$0xff] }
  0x3b   : > { %2184 = vmatprep.mubr.msk.f32.mxu0 %vm665_vm0, %v567_v49  ;;  %v865_v49 = vld [vmem:[%s3022_s4 + $0x30] sm:$0xff] }
  0x3d   : > { %1118 = vperm.xlu1 %2428, %v1096_v54   ;;  %1113 = vperm.xlu0 %2427, %v1095_v55  }
  0x3e   : > { %2185 = vmatmul.mubr.msk.f32.gmra.mrb[14].mxu0 %vm665_vm0, %v568_v52 }
  0x3f   : > { %2195 = vmatprep.mubr.msk.f32.mxu0 %vm915_vm1, %v859_v53 }
  0x41   : > { %632 = vperm.xlu1 %2428, %v578_v56   ;;  %627 = vperm.xlu0 %2427, %v577_v57   ;;  %v1085_v57 = vld [vmem:[%s3026_s8] sm:$0xff] }
  0x42   : > { %2215 = vmatprep.mubr.msk.f32.mxu1 %vm915_vm1, %v1085_v57 }
  0x45   : > { %1307 = vperm.xlu1 %2428, %v2018_v58   ;;  %1302 = vperm.xlu0 %2427, %v2017_v59  }
  0x49   : > { %642 = vperm.xlu1 %2428, %v580_v60   ;;  %637 = vperm.xlu0 %2427, %v579_v61  }
  0x4d   : > { %1317 = vperm.xlu1 %2428, %v2020_v62   ;;  %1312 = vperm.xlu0 %2427, %v2019_v63  }
  0x51   : > { %652 = vperm.xlu1 %2428, %v582_v0   ;;  %647 = vperm.xlu0 %2427, %v581_v1  }
  0x55   : > { %1327 = vperm.xlu1 %2428, %v2022_v2   ;;  %1322 = vperm.xlu0 %2427, %v2021_v3  }
  0x59   : > { %662 = vperm.xlu1 %2428, %v584_v4   ;;  %657 = vperm.xlu0 %2427, %v583_v5  }
  0x5d   : > { %1337 = vperm.xlu1 %2428, %v2024_v6   ;;  %1332 = vperm.xlu0 %2427, %v2023_v7  }
  0x61   : > { %1128 = vperm.xlu1 %2428, %v1098_v8   ;;  %1123 = vperm.xlu0 %2427, %v1097_v9  }
  0x65   : > { %1550 = vperm.xlu1 %2428, %v2050_v10   ;;  %1545 = vperm.xlu0 %2427, %v2049_v11  }
  0x69   : > { %1138 = vperm.xlu1 %2428, %v1100_v12   ;;  %1133 = vperm.xlu0 %2427, %v1099_v13  }
  0x6d   : > { %1560 = vperm.xlu1 %2428, %v2052_v14   ;;  %1555 = vperm.xlu0 %2427, %v2051_v15  }
  0x71   : > { %1711 = vperm.xlu1 %2428, %v1701_v16   ;;  %1706 = vperm.xlu0 %2427, %v1700_v17  }
  0x75   : > { %1721 = vperm.xlu1 %2428, %v1703_v18   ;;  %1716 = vperm.xlu0 %2427, %v1702_v19  }
  0x79   : > { %1829 = vperm.xlu0 %2427, %v1826_v20  }
  0x88   : > { %v528_v22 = vpop.permute.xlu1 %527  ;;  %v494_v23 = vpop.permute.xlu0 %493 }
  0x89   : > { %v517_v24 = vmul.f32 %v1972_v21, %v494_v23 }
  0x8b   : > { %v2821_v27 = vadd.f32 %v528_v22, %v517_v24 }
  0x8c   : > { %v533_v25 = vpop.permute.xlu1 %532  ;;  %v499_v26 = vpop.permute.xlu0 %498 }
  0x8d   : > { %v518_v28 = vmul.f32 %v1972_v21, %v499_v26  ;;  %v549_v32 = vmax.f32 %v2821_v27, 0.0 }
  0x8f   : > { %v2823_v29 = vadd.f32 %v533_v25, %v518_v28 }
  0x90   : > { %v509_v30 = vpop.permute.xlu1 %508  ;;  %v504_v31 = vpop.permute.xlu0 %503 }
  0x91   : > { %v550_v33 = vmax.f32 %v2823_v29, 0.0  ;;  %v520_v34 = vmul.f32 %v1972_v21, %v509_v30  ;;  %v519_v35 = vmul.f32 %v1972_v21, %v504_v31 }
  0x93   : > { %v2304_v36 = vpack.c.bf16 %v550_v33, %v549_v32 }
  0x94   : > { %v543_v37 = vpop.permute.xlu1 %542  ;;  %v538_v38 = vpop.permute.xlu0 %537 }
  0x95   : > { %v2831_v39 = vadd.f32 %v543_v37, %v520_v34  ;;  %v2833_v40 = vadd.f32 %v538_v38, %v519_v35  ;;  %2305 = vmatprep.subr.bf16.mxu0 %v2304_v36 }
  0x96   : > { %2307 = vmatpush3.bf16.msra.mxu0 %v2304_v36 }
  0x97   : > { %v552_v41 = vmax.f32 %v2831_v39, 0.0  ;;  %v551_v42 = vmax.f32 %v2833_v40, 0.0  ;;  %v2012_v39 = vld [vmem:[%s3022_s4 + $0x58] sm:$0xff]  ;;  %v2013_v40 = vld [vmem:[%s3022_s4 + $0x60] sm:$0xff] }
  0x98   : > { %v593_v58 = vpop.permute.xlu1 %592  ;;  %v588_v59 = vpop.permute.xlu0 %587 }
  0x99   : > { %v2308_v43 = vpack.c.bf16 %v552_v41, %v551_v42 }
  0x9b   : > { %2309 = vmatprep.subr.bf16.mxu0 %v2308_v43 }
  0x9c   : > { %2311 = vmatpush3.bf16.msra.mxu0 %v2308_v43  ;;  %v883_v60 = vpop.permute.xlu1 %882  ;;  %v878_v61 = vpop.permute.xlu0 %877 }
  0x9d   : > { %v2354_v4 = vadd.f32 %v883_v60, %v593_v58  ;;  %v2356_v6 = vadd.f32 %v878_v61, %v588_v59 }
  0x9f   : > { %2196 = vmatmul.mubr.msk.f32.vlgmr.msra.gmra.mrb[0].mxu0 %vm915_vm1, %v860_v44 }
  0xa0   : > { %2198 = vmatprep.mubr.msk.f32.mxu0 %vm915_vm1, %v861_v45  ;;  %v603_v62 = vpop.permute.xlu1 %602  ;;  %v598_v63 = vpop.permute.xlu0 %597 }
  0xa3   : > { %2199 = vmatmul.mubr.msk.f32.gmra.mrb[2].mxu0 %vm915_vm1, %v862_v46 }
  0xa4   : > { %2201 = vmatprep.mubr.msk.f32.mxu0 %vm915_vm1, %v863_v47  ;;  %v893_v0 = vpop.permute.xlu1 %892  ;;  %v888_v1 = vpop.permute.xlu0 %887 }
  0xa5   : > { %v2358_v12 = vadd.f32 %v893_v0, %v603_v62  ;;  %v2360_v14 = vadd.f32 %v888_v1, %v598_v63 }
  0xa7   : > { %2202 = vmatmul.mubr.msk.f32.gmra.mrb[4].mxu0 %vm915_vm1, %v864_v48 }
  0xa8   : > { %2204 = vmatprep.mubr.msk.f32.mxu0 %vm915_vm1, %v865_v49  ;;  %v613_v2 = vpop.permute.xlu1 %612  ;;  %v608_v3 = vpop.permute.xlu0 %607 }
  0xab   : > { %2205 = vmatmul.mubr.msk.f32.gmra.mrb[6].mxu0 %vm915_vm1, %v866_v50 }
  0xac   : > { %v903_v5 = vpop.permute.xlu1 %902  ;;  %v898_v7 = vpop.permute.xlu0 %897 }
  0xad   : > { %v2362_v26 = vadd.f32 %v903_v5, %v613_v2  ;;  %v2364_v28 = vadd.f32 %v898_v7, %v608_v3 }
  0xb0   : > { %v623_v17 = vpop.permute.xlu1 %622  ;;  %v618_v20 = vpop.permute.xlu0 %617 }
  0xb4   : > { %v913_v30 = vpop.permute.xlu1 %912  ;;  %v908_v31 = vpop.permute.xlu0 %907 }
  0xb5   : > { %v2366_v38 = vadd.f32 %v913_v30, %v623_v17  ;;  %v2368_v44 = vadd.f32 %v908_v31, %v618_v20  ;;  %v2009_v17 = vld [vmem:[%s3022_s4 + $0x40] sm:$0xff] }
  0xb6   : > { %2235 = vmatprep.mubr.msk.f32.mxu0 %vm915_vm1, %v2009_v17 }
  0xb8   : > { %v1104_v20 = vpop.permute.xlu0 %1103 }
  0xbc   : > { %v1114_v31 = vpop.permute.xlu0 %1113 }
 0x109   : > { %v2869_v51 = vpop.f32.mrb[10].mxu0 }
 0x10a   : > { %v2871_v52 = vpop.f32.mrb[11].mxu0 }
 0x10d   : > { %v2873_v53 = vpop.f32.mrb[12].mxu0 }
 0x10e   : > { %v2875_v54 = vpop.f32.mrb[13].mxu0 }
 0x111   : > { %v2877_v55 = vpop.f32.mrb[14].mxu0 }
 0x112   : > { %v2879_v56 = vpop.f32.mrb[15].mxu0 }
 0x172   : > { %v2197_v8 = vpop.f32.mrb[0].mxu0 }
 0x173   : > { %v2355_v9 = vadd.f32 %v2354_v4, %v2197_v8  ;;  %v1006_v10 = vpop.f32.mrb[1].mxu0 }
 0x174   : > { %v2357_v11 = vadd.f32 %v2356_v6, %v1006_v10  ;;  %v1086_v10 = vld [vmem:[%s3026_s8 + $0x8] sm:$0xff] }
 0x175   : > { %v1998_v13 = vmul.f32 -1.442695, %v2355_v9 }
 0x176   : > { %v1997_v15 = vmul.f32 -1.442695, %v2357_v11  ;;  %v2200_v16 = vpop.f32.mrb[2].mxu0  ;;  %v1087_v11 = vld [vmem:[%s3026_s8 + $0x10] sm:$0xff] }
 0x177   : > { %2429 = vpow2.f32 %v1998_v13  ;;  %v2359_v18 = vadd.f32 %v2358_v12, %v2200_v16  ;;  %v1016_v19 = vpop.f32.mrb[3].mxu0  ;;  %v1088_v12 = vld [vmem:[%s3026_s8 + $0x18] sm:$0xff]  ;;  %v1089_v13 = vld [vmem:[%s3026_s8 + $0x20] sm:$0xff] }
 0x178   : > { %2431 = vpow2.f32 %v1997_v15  ;;  %v2361_v21 = vadd.f32 %v2360_v14, %v1016_v19  ;;  %v1090_v14 = vld [vmem:[%s3026_s8 + $0x28] sm:$0xff]  ;;  %v1091_v15 = vld [vmem:[%s3026_s8 + $0x30] sm:$0xff]  ;;  %v1092_v16 = vld [vmem:[%s3026_s8 + $0x38] sm:$0xff]  ;;  %v1109_v19 = vpop.permute.xlu1 %1108 }
 0x179   : > { %v2000_v22 = vmul.f32 -1.442695, %v2359_v18  ;;  %v2011_v18 = vld [vmem:[%s3022_s4 + $0x50] sm:$0xff] }
 0x17a   : > { %v1999_v23 = vmul.f32 -1.442695, %v2361_v21  ;;  %v2203_v24 = vpop.f32.mrb[4].mxu0 }
 0x17b   : > { %2433 = vpow2.f32 %v2000_v22  ;;  %v1026_v25 = vpop.f32.mrb[5].mxu0  ;;  %v2363_v34 = vadd.f32 %v2362_v26, %v2203_v24 }
 0x17c   : > { %2435 = vpow2.f32 %v1999_v23  ;;  %v2365_v36 = vadd.f32 %v2364_v28, %v1026_v25  ;;  %v1119_v26 = vpop.permute.xlu1 %1118 }
 0x17d   : > { %2437 = vtanh.f32 %v2363_v34 }
 0x17e   : > { %v2206_v35 = vpop.f32.mrb[6].mxu0  ;;  %2439 = vtanh.f32 %v2365_v36 }
 0x17f   : > { %v1036_v37 = vpop.f32.mrb[7].mxu0  ;;  %v2367_v47 = vadd.f32 %v2366_v38, %v2206_v35 }
 0x180   : > { %v2369_v49 = vadd.f32 %v2368_v44, %v1036_v37 }
 0x181   : > { %v2430_v43 = vpop.eup %2429 }
 0x182   : > { %v2432_v45 = vpop.eup %2431  ;;  %v1066_v46 = vadd.f32 1.0, %v2430_v43 }
 0x183   : > { %v1065_v48 = vadd.f32 1.0, %v2432_v45 }
 0x184   : > { %2441 = vrcp.f32 %v1066_v46  ;;  %v2016_v46 = vld [vmem:[%s3022_s4 + $0x78] sm:$0xff] }
 0x185   : > { %v2434_v50 = vpop.eup %2433  ;;  %2443 = vrcp.f32 %v1065_v48  ;;  %v633_v48 = vpop.permute.xlu1 %632 }
 0x186   : > { %v2436_v57 = vpop.eup %2435  ;;  %v1068_v58 = vadd.f32 1.0, %v2434_v50  ;;  %2445 = vtanh.f32 %v2367_v47  ;;  %v2037_v47 = vld [vmem:[%s3026_s8 + $0x40] sm:$0xff] }
 0x187   : > { %v1067_v59 = vadd.f32 1.0, %v2436_v57  ;;  %2447 = vtanh.f32 %v2369_v49  ;;  %v2438_v60 = vpop.eup %2437  ;;  %v628_v49 = vpop.permute.xlu0 %627 }
 0x188   : > { %2449 = vrcp.f32 %v1068_v58  ;;  %v2440_v61 = vpop.eup %2439 }
 0x189   : > { %2451 = vrcp.f32 %v1067_v59  ;;  %v1308_v50 = vpop.permute.xlu1 %1307 }
 0x18b   : > { %v1303_v57 = vpop.permute.xlu0 %1302 }
 0x18d   : > { %v643_v58 = vpop.permute.xlu1 %642 }
 0x18e   : > { %v2442_v62 = vpop.eup %2441 }
 0x18f   : > { %v2444_v63 = vpop.eup %2443  ;;  %v1082_v0 = vmul.f32 %v2442_v62, %v2438_v60  ;;  %v638_v59 = vpop.permute.xlu0 %637 }
 0x190   : > { %v2446_v1 = vpop.eup %2445  ;;  %v1081_v2 = vmul.f32 %v2444_v63, %v2440_v61 }
 0x191   : > { %v2448_v3 = vpop.eup %2447  ;;  %v1318_v60 = vpop.permute.xlu1 %1317 }
 0x192   : > { %v2450_v4 = vpop.eup %2449  ;;  %v2312_v5 = vpack.c.bf16 %v1082_v0, %v1081_v2  ;;  %v836_v2 = vadd.f32 %v2869_v51, %v643_v58 }
 0x193   : > { %v2452_v6 = vpop.eup %2451  ;;  %v1084_v7 = vmul.f32 %v2450_v4, %v2446_v1  ;;  %v1313_v61 = vpop.permute.xlu0 %1312  ;;  %v2370_v4 = vadd.f32 %v1308_v50, %v633_v48 }
 0x194   : > { %2313 = vmatprep.subr.bf16.mxu1 %v2312_v5  ;;  %v1083_v8 = vmul.f32 %v2452_v6, %v2448_v3  ;;  %v831_v3 = vadd.f32 %v2871_v52, %v638_v59 }
 0x195   : > { %2315 = vmatpush3.bf16.msra.mxu1 %v2312_v5  ;;  %v653_v62 = vpop.permute.xlu1 %652 }
 0x196   : > { %v2316_v9 = vpack.c.bf16 %v1084_v7, %v1083_v8  ;;  %v846_v7 = vadd.f32 %v2873_v53, %v653_v62  ;;  %v2375_v8 = vadd.f32 %v1318_v60, %v836_v2  ;;  %v2038_v62 = vld [vmem:[%s3026_s8 + $0x48] sm:$0xff] }
 0x197   : > { %v648_v63 = vpop.permute.xlu0 %647  ;;  %v2042_v2 = vld [vmem:[%s3026_s8 + $0x68] sm:$0xff] }
 0x198   : > { %2317 = vmatprep.subr.bf16.mxu1 %v2316_v9 }
 0x199   : > { %2319 = vmatpush3.bf16.msra.mxu1 %v2316_v9  ;;  %v1328_v0 = vpop.permute.xlu1 %1327  ;;  %v2372_v9 = vadd.f32 %v1303_v57, %v628_v49 }
 0x19b   : > { %v1323_v1 = vpop.permute.xlu0 %1322 }
 0x19c   : > { %2216 = vmatmul.mubr.msk.f32.vlgmr.msra.gmra.mrb[0].mxu1 %vm915_vm1, %v1086_v10  ;;  %v841_v10 = vadd.f32 %v2875_v54, %v648_v63  ;;  %v2039_v63 = vld [vmem:[%s3026_s8 + $0x50] sm:$0xff] }
 0x19d   : > { %2218 = vmatprep.mubr.msk.f32.mxu1 %vm915_vm1, %v1087_v11  ;;  %v663_v5 = vpop.permute.xlu1 %662 }
 0x19e   : > { %v856_v52 = vadd.f32 %v2877_v55, %v663_v5  ;;  %v2384_v54 = vadd.f32 %v1323_v1, %v841_v10  ;;  %v2041_v1 = vld [vmem:[%s3026_s8 + $0x60] sm:$0xff] }
 0x19f   : > { %v658_v6 = vpop.permute.xlu0 %657  ;;  %v1696_v5 = vld [vmem:[%s3028_s10] sm:$0xff] }
 0x1a0   : > { %2219 = vmatmul.mubr.msk.f32.gmra.mrb[2].mxu1 %vm915_vm1, %v1088_v12  ;;  %v851_v53 = vadd.f32 %v2879_v56, %v658_v6 }
 0x1a1   : > { %2221 = vmatprep.mubr.msk.f32.mxu1 %vm915_vm1, %v1089_v13  ;;  %v2378_v13 = vadd.f32 %v1313_v61, %v831_v3  ;;  %v2043_v3 = vld [vmem:[%s3026_s8 + $0x70] sm:$0xff] }
 0x1a4   : > { %2222 = vmatmul.mubr.msk.f32.gmra.mrb[4].mxu1 %vm915_vm1, %v1090_v14 }
 0x1a5   : > { %2224 = vmatprep.mubr.msk.f32.mxu1 %vm915_vm1, %v1091_v15 }
 0x1a8   : > { %2225 = vmatmul.mubr.msk.f32.gmra.mrb[6].mxu1 %vm915_vm1, %v1092_v16 }
 0x1a9   : > { %2238 = vmatprep.mubr.msk.f32.mxu1 %vm915_vm1, %v2011_v18 }
 0x26f   : > { %v2217_v21 = vpop.f32.mrb[0].mxu1 }
 0x270   : > { %v1237_v22 = vadd.f32 %v2217_v21, %v1109_v19  ;;  %v1231_v23 = vpop.f32.mrb[1].mxu1  ;;  %v2381_v21 = vadd.f32 %v1328_v0, %v846_v7  ;;  %v2040_v0 = vld [vmem:[%s3026_s8 + $0x58] sm:$0xff] }
 0x271   : > { %v1232_v24 = vadd.f32 %v1231_v23, %v1104_v20 }
 0x272   : > { %v1271_v25 = vadd.f32 %v1237_v22, %v550_v33 }
 0x273   : > { %v1270_v28 = vadd.f32 %v1232_v24, %v549_v32  ;;  %v2220_v30 = vpop.f32.mrb[2].mxu1  ;;  %v2010_v32 = vld [vmem:[%s3022_s4 + $0x48] sm:$0xff] }
 0x274   : > { %v1275_v34 = vmul.f32 0.70710677, %v1271_v25  ;;  %v1247_v35 = vadd.f32 %v2220_v30, %v1119_v26  ;;  %v1241_v36 = vpop.f32.mrb[3].mxu1 }
 0x275   : > { %v1274_v37 = vmul.f32 0.70710677, %v1270_v28  ;;  %v1242_v38 = vadd.f32 %v1241_v36, %v1114_v31  ;;  %v1338_v28 = vpop.permute.xlu1 %1337  ;;  %v1333_v31 = vpop.permute.xlu0 %1332 }
 0x276   : > { %v1273_v43 = vadd.f32 %v1247_v35, %v552_v41  ;;  %v2014_v41 = vld [vmem:[%s3022_s4 + $0x68] sm:$0xff]  ;;  %v2390_v35 = vadd.f32 %v1333_v31, %v851_v53 }
 0x277   : > { %v2320_v44 = vpack.c.bf16 %v1275_v34, %v1274_v37  ;;  %v1272_v45 = vadd.f32 %v1242_v38, %v551_v42  ;;  %v2015_v42 = vld [vmem:[%s3022_s4 + $0x70] sm:$0xff]  ;;  %v2387_v34 = vadd.f32 %v1338_v28, %v856_v52 }
 0x278   : > { %v1277_v29 = vmul.f32 0.70710677, %v1273_v43 }
 0x279   : > { %v1276_v33 = vmul.f32 0.70710677, %v1272_v45  ;;  %2321 = vmatprep.subr.bf16.mxu0 %v2320_v44  ;;  %2350 = vmatprep.subr.bf16.mxu1 %v2320_v44  ;;  %v1129_v6 = vpop.permute.xlu1 %1128  ;;  %v1124_v7 = vpop.permute.xlu0 %1123 }
 0x27a   : > { %2323 = vmatpush3.bf16.msra.mxu0 %v2320_v44  ;;  %2352 = vmatpush3.bf16.msra.mxu1 %v2320_v44 }
 0x27b   : > { %v2324_v27 = vpack.c.bf16 %v1277_v29, %v1276_v33 }
 0x27d   : > { %2325 = vmatprep.subr.bf16.mxu0 %v2324_v27  ;;  %2351 = vmatprep.subr.bf16.mxu1 %v2324_v27 }
 0x27e   : > { %2327 = vmatpush3.bf16.msra.mxu0 %v2324_v27  ;;  %2353 = vmatpush3.bf16.msra.mxu1 %v2324_v27 }
 0x281   : > { %2236 = vmatmul.mubr.msk.f32.vlgmr.msra.gmra.mrb[8].mxu0 %vm915_vm1, %v2010_v32  ;;  %2239 = vmatmul.mubr.msk.f32.vlgmr.msra.gmra.mrb[8].mxu1 %vm915_vm1, %v2012_v39 }
 0x282   : > { %2241 = vmatprep.mubr.msk.f32.mxu1 %vm915_vm1, %v2013_v40 }
 0x285   : > { %2242 = vmatmul.mubr.msk.f32.gmra.mrb[10].mxu1 %vm915_vm1, %v2014_v41 }
 0x286   : > { %2244 = vmatprep.mubr.msk.f32.mxu1 %vm915_vm1, %v2015_v42 }
 0x289   : > { %2245 = vmatmul.mubr.msk.f32.gmra.mrb[12].mxu1 %vm915_vm1, %v2016_v46 }
 0x28a   : > { %2255 = vmatprep.mubr.msk.f32.mxu1 %vm915_vm1, %v2037_v47 }
 0x354   : > { %v2237_v11 = vpop.f32.mrb[8].mxu0  ;;  %v2240_v12 = vpop.f32.mrb[8].mxu1 }
 0x355   : > { %v2371_v14 = vadd.f32 %v2370_v4, %v2237_v11  ;;  %v2376_v15 = vadd.f32 %v2375_v8, %v2240_v12  ;;  %v1430_v16 = vpop.f32.mrb[9].mxu0  ;;  %v1440_v17 = vpop.f32.mrb[9].mxu1  ;;  %v2044_v4 = vld [vmem:[%s3026_s8 + $0x78] sm:$0xff] }
 0x356   : > { %v2373_v18 = vadd.f32 %v2372_v9, %v1430_v16  ;;  %v2379_v51 = vadd.f32 %v2378_v13, %v1440_v17  ;;  %v1551_v8 = vpop.permute.xlu1 %1550  ;;  %v1546_v9 = vpop.permute.xlu0 %1545 }
 0x357   : > { %v2034_v19 = vmul.f32 -1.442695, %v2371_v14  ;;  %v2036_v20 = vmul.f32 -1.442695, %v2376_v15  ;;  %v2392_v16 = vadd.f32 %v1551_v8, %v1129_v6  ;;  %v2394_v17 = vadd.f32 %v1546_v9, %v1124_v7 }
 0x358   : > { %v2033_v22 = vmul.f32 -1.442695, %v2373_v18  ;;  %v2035_v23 = vmul.f32 -1.442695, %v2379_v51  ;;  %v2243_v24 = vpop.f32.mrb[10].mxu1 }
 0x359   : > { %2453 = vpow2.f32 %v2034_v19  ;;  %v2382_v25 = vadd.f32 %v2381_v21, %v2243_v24  ;;  %v1450_v26 = vpop.f32.mrb[11].mxu1 }
 0x35a   : > { %2455 = vpow2.f32 %v2036_v20  ;;  %v2385_v30 = vadd.f32 %v2384_v54, %v1450_v26  ;;  %v1139_v12 = vpop.permute.xlu1 %1138  ;;  %v1134_v13 = vpop.permute.xlu0 %1133 }
 0x35b   : > { %2457 = vpow2.f32 %v2033_v22 }
 0x35c   : > { %2459 = vpow2.f32 %v2035_v23  ;;  %v2246_v55 = vpop.f32.mrb[12].mxu1 }
 0x35d   : > { %v2388_v36 = vadd.f32 %v2387_v34, %v2246_v55  ;;  %v1460_v37 = vpop.f32.mrb[13].mxu1  ;;  %2461 = vtanh.f32 %v2382_v25 }
 0x35e   : > { %v2391_v38 = vadd.f32 %v2390_v35, %v1460_v37  ;;  %2463 = vtanh.f32 %v2385_v30  ;;  %v1561_v18 = vpop.permute.xlu1 %1560  ;;  %v1556_v52 = vpop.permute.xlu0 %1555  ;;  %v1697_v35 = vld [vmem:[%s3028_s10 + $0x8] sm:$0xff]  ;;  %v1699_v37 = vld [vmem:[%s3028_s10 + $0x18] sm:$0xff] }
 0x35f   : > { %2465 = vtanh.f32 %v2388_v36  ;;  %v2396_v53 = vadd.f32 %v1561_v18, %v1139_v12  ;;  %v2398_v23 = vadd.f32 %v1556_v52, %v1134_v13  ;;  %v1698_v36 = vld [vmem:[%s3028_s10 + $0x10] sm:$0xff] }
 0x360   : > { %2467 = vtanh.f32 %v2391_v38  ;;  %v2486_v38 = vmov 0.0|0.0  }
 0x363   : > { %v2454_v56 = vpop.eup %2453 }
 0x364   : > { %v2456_v43 = vpop.eup %2455  ;;  %v1490_v44 = vadd.f32 1.0, %v2454_v56  ;;  %v2488_v56 = vmov 0.0  }
 0x365   : > { %v2458_v45 = vpop.eup %2457  ;;  %v1492_v29 = vadd.f32 1.0, %v2456_v43  ;;  %v1712_v43 = vpop.permute.xlu1 %1711 }
 0x366   : > { %v2460_v33 = vpop.eup %2459  ;;  %2469 = vrcp.f32 %v1490_v44  ;;  %v1489_v27 = vadd.f32 1.0, %v2458_v45  ;;  %v1707_v44 = vpop.permute.xlu0 %1706 }
 0x367   : > { %2471 = vrcp.f32 %v1492_v29  ;;  %v1491_v32 = vadd.f32 1.0, %v2460_v33  ;;  %v2462_v39 = vpop.eup %2461 }
 0x368   : > { %2473 = vrcp.f32 %v1489_v27  ;;  %v2464_v40 = vpop.eup %2463 }
 0x369   : > { %2475 = vrcp.f32 %v1491_v32  ;;  %v2466_v41 = vpop.eup %2465 }
 0x36a   : > { %v2468_v42 = vpop.eup %2467 }
 0x370   : > { %v2470_v46 = vpop.eup %2469 }
 0x371   : > { %v2472_v47 = vpop.eup %2471  ;;  %v1506_v48 = vmul.f32 %v2470_v46, %v2462_v39  ;;  %v1722_v39 = vpop.permute.xlu1 %1721 }
 0x372   : > { %v2474_v49 = vpop.eup %2473  ;;  %v1508_v50 = vmul.f32 %v2472_v47, %v2466_v41 }
 0x373   : > { %v2476_v57 = vpop.eup %2475  ;;  %v1505_v58 = vmul.f32 %v2474_v49, %v2464_v40 }
 0x374   : > { %v1507_v59 = vmul.f32 %v2476_v57, %v2468_v42  ;;  %v1717_v42 = vpop.permute.xlu0 %1716 }
 0x375   : > { %v2328_v60 = vpack.c.bf16 %v1506_v48, %v1505_v58 }
 0x376   : > { %v2332_v61 = vpack.c.bf16 %v1508_v50, %v1507_v59  ;;  %v1825_v59 = vld [vmem:[%s3030_s12] sm:$0x1] }
 0x377   : > { %2329 = vmatprep.subr.bf16.mxu1 %v2328_v60 }
 0x378   : > { %2331 = vmatpush3.bf16.msra.mxu1 %v2328_v60  ;;  %v1832_v60 = vlaneseq }
 0x379   : > { %2333 = vmatprep.subr.bf16.mxu1 %v2332_v61 }
 0x37c   : > { %2335 = vmatpush3.bf16.msra.mxu1 %v2332_v61  ;;  %v1833_v61 = vshrl.u32 %v1832_v60, 7 }
 0x37f   : > { %2256 = vmatmul.mubr.msk.f32.vlgmr.msra.gmra.mrb[14].mxu1 %vm915_vm1, %v2038_v62  ;;  %v1834_v62 = vsub.s32 0, %v1833_v61 }
 0x380   : > { %2258 = vmatprep.mubr.msk.f32.mxu1 %vm915_vm1, %v2039_v63  ;;  %v1830_v63 = vpop.permute.xlu0 %1829 }
 0x383   : > { %2259 = vmatmul.mubr.msk.f32.gmra.mrb[16].mxu1 %vm915_vm1, %v2040_v0  ;;  %v1835_v0 = vrot.slane %v1830_v63, %v1834_v62 }
 0x384   : > { %2261 = vmatprep.mubr.msk.f32.mxu1 %vm915_vm1, %v2041_v1 }
 0x387   : > { %2262 = vmatmul.mubr.msk.f32.gmra.mrb[4].mxu1 %vm915_vm1, %v2042_v2 }
 0x388   : > { %2264 = vmatprep.mubr.msk.f32.mxu1 %vm915_vm1, %v2043_v3 }
 0x38b   : > { %2265 = vmatmul.mubr.msk.f32.gmra.mrb[6].mxu1 %vm915_vm1, %v2044_v4 }
 0x38c   : > { %2275 = vmatprep.mubr.msk.f32.mxu1 %vm915_vm1, %v1696_v5 }
 0x452   : > { %v2257_v10 = vpop.f32.mrb[14].mxu1 }
 0x453   : > { %v1653_v11 = vpop.f32.mrb[15].mxu1 }
 0x456   : > { %v2260_v14 = vpop.f32.mrb[16].mxu1 }
 0x457   : > { %v1661_v15 = vpop.f32.mrb[17].mxu1 }
 0x45a   : > { %v2263_v51 = vpop.f32.mrb[4].mxu1 }
 0x45b   : > { %v2393_v19 = vadd.f32 %v2392_v16, %v2263_v51  ;;  %v1669_v20 = vpop.f32.mrb[5].mxu1 }
 0x45c   : > { %v2395_v21 = vadd.f32 %v2394_v17, %v1669_v20 }
 0x45d   : > { %v1693_v22 = vmul.f32 0.70710677, %v2393_v19 }
 0x45e   : > { %v1692_v24 = vmul.f32 0.70710677, %v2395_v21  ;;  %v2266_v54 = vpop.f32.mrb[6].mxu1 }
 0x45f   : > { %v2397_v25 = vadd.f32 %v2396_v53, %v2266_v54  ;;  %v1679_v26 = vpop.f32.mrb[7].mxu1 }
 0x460   : > { %v2336_v28 = vpack.c.bf16 %v1693_v22, %v1692_v24  ;;  %v2399_v30 = vadd.f32 %v2398_v23, %v1679_v26 }
 0x461   : > { %v1695_v31 = vmul.f32 0.70710677, %v2397_v25 }
 0x462   : > { %v1694_v34 = vmul.f32 0.70710677, %v2399_v30  ;;  %2337 = vmatprep.subr.bf16.mxu1 %v2336_v28 }
 0x463   : > { %2339 = vmatpush3.bf16.msra.mxu1 %v2336_v28 }
 0x464   : > { %v2340_v55 = vpack.c.bf16 %v1695_v31, %v1694_v34 }
 0x466   : > { %2341 = vmatprep.subr.bf16.mxu1 %v2340_v55 }
 0x467   : > { %2343 = vmatpush3.bf16.msra.mxu1 %v2340_v55 }
 0x468   : > { %2344 = vmatprep.subr.bf16.mxu1 %v2486_v38 }
 0x46a   : > { %2276 = vmatmul.mubr.msk.f32.vlgmr.msra.gmra.mrb[18].mxu1 %vm915_vm1, %v1697_v35 }
 0x46b   : > { %2278 = vmatprep.mubr.msk.f32.mxu1 %vm915_vm1, %v1698_v36 }
 0x46e   : > { %2279 = vmatmul.mubr.msk.f32.gmra.mrb[20].mxu1 %vm915_vm1, %v1699_v37 }
 0x46f   : > { %2289 = vmatprep.mubr.msk.f32.mxu1 %vm2487_vm2, %v2488_v56 }
 0x53d   : > { %v2277_v45 = vpop.f32.mrb[18].mxu1 }
 0x53e   : > { %v1808_v29 = vadd.f32 %v2277_v45, %v1712_v43  ;;  %v1802_v33 = vpop.f32.mrb[19].mxu1 }
 0x53f   : > { %v1803_v27 = vadd.f32 %v1802_v33, %v1707_v44 }
 0x540   : > { %v1822_v32 = vmax.f32 %v1808_v29, 0.0 }
 0x541   : > { %v1821_v40 = vmax.f32 %v1803_v27, 0.0  ;;  %v2280_v41 = vpop.f32.mrb[20].mxu1 }
 0x542   : > { %v1818_v46 = vadd.f32 %v2280_v41, %v1722_v39  ;;  %v1812_v47 = vpop.f32.mrb[21].mxu1 }
 0x543   : > { %v2345_v48 = vpack.c.bf16 %v1822_v32, %v1821_v40  ;;  %v1813_v49 = vadd.f32 %v1812_v47, %v1717_v42 }
 0x544   : > { %v1824_v50 = vmax.f32 %v1818_v46, 0.0 }
 0x545   : > { %v1823_v57 = vmax.f32 %v1813_v49, 0.0  ;;  %2346 = vmatpush3.bf16.msra.mxu1 %v2345_v48 }
 0x546   : > { %2347 = vmatprep.subr.bf16.mxu1 %v2486_v38 }
 0x547   : > { %v2348_v58 = vpack.c.bf16 %v1824_v50, %v1823_v57 }
 0x549   : > { %2349 = vmatpush3.bf16.msra.mxu1 %v2348_v58 }
 0x54c   : > { %2290 = vmatmul.mubr.msk.f32.vlgmr.msra.gmra.mrb[22].mxu1 %vm915_vm1, %v1825_v59 }
 0x61f   : > { %v1905_v1 = vpop.f32.mrb[22].mxu1 }
 0x620   : > { %v1906_v2 = vadd.f32 %v1905_v1, %v1835_v0  ;;  %v2291_v3 = vpop.f32.mrb[23].mxu1 }
 0x622   : > { %1909 = vst [vmem:[%s479_s13] sm:$0x1] %v1906_v2 }
 0x623 PF: > { %s26_s15 = sadd.s32 1, %s2483_s15  }
 0x624   : > { %p23_p4 = scmp.ge.s32.totalorder %s26_s15, 4  }
 0x626   :  { %25 = sbr.rel (!%p23_p4) target bundleno = 3 (0x3), region = 113 }

</bundles_post_ra>
